<compile_context>
chip_gen: v5e
topology: v5e:2x2
jax: 0.10.0
libtpu: 0.0.40
codegen_flags: <defaults>
</compile_context>

<pallas_src>
import jax
import jax.numpy as jnp
from jax.experimental import pallas as pl
from jax.experimental.pallas import tpu as pltpu

REFS = {
    "phi": 0.618034,
    "e": 0.367879,
    "pi": 0.318309,
    "sqrt2": 0.707107,
    "ln2": 0.693147,
}
NUM_REFS = len(REFS)
LN_EPS = 1e-5


def _round_up(a, b):
    return ((a + b - 1) // b) * b


def _cdiv(a, b):
    return (a + b - 1) // b


def _vmem_capacity_bytes():
    """Per-core VMEM capacity; conservative 64 MiB (v7x) fallback."""
    try:
        return int(pltpu.get_tpu_info().vmem_capacity_bytes)
    except Exception:
        return 64 << 20


def _layernorm(x, gamma, beta):
    """One-pass LN statistics: mean and E[x^2] (one fewer XLU lane reduce)."""
    mu = jnp.mean(x, axis=-1, keepdims=True)
    ex2 = jnp.mean(x * x, axis=-1, keepdims=True)
    var = jnp.maximum(ex2 - mu * mu, 0.0)
    xn = (x - mu) * jax.lax.rsqrt(var + LN_EPS)
    return xn * gamma + beta


def cronkle_kernel_fused(x_ref, gamma_ref, beta_ref, w1_ref, b1_ref, w2_ref,
                         b2_ref, o_ref):
    """Fused-group path (D <= 256): full (TM,D)x(D,5D) and (TM,5D)x(5D,D)."""
    x = x_ref[...].astype(jnp.float32)                         # (TM, D)
    xn = _layernorm(x, gamma_ref[...], beta_ref[...])

    refs = jnp.dot(xn.astype(jnp.bfloat16), w1_ref[...],
                   preferred_element_type=jnp.float32) + b1_ref[...]  # (TM, 5D)
    # refc constants are folded into b2 at prep time.
    y = refs - 0.1 * jax.nn.sigmoid(refs)
    out = x + b2_ref[...] + jnp.dot(y.astype(jnp.bfloat16), w2_ref[...],
                                    preferred_element_type=jnp.float32)
    o_ref[...] = out.astype(o_ref.dtype)


def cronkle_kernel_split(x_ref, gamma_ref, beta_ref, w1_ref, b1_ref, w2_ref,
                         b2_ref, o_ref):
    """Split-group path (large D): static 5-way loop, (TM,D) live intermediate."""
    x = x_ref[...].astype(jnp.float32)                         # (TM, D)
    xn = _layernorm(x, gamma_ref[...], beta_ref[...])
    xn_b = xn.astype(jnp.bfloat16)

    acc = x + b2_ref[...]                                      # residual + folded bias
    for g in range(NUM_REFS):
        refs_g = jnp.dot(xn_b, w1_ref[g],
                         preferred_element_type=jnp.float32) + b1_ref[g]
        y_g = refs_g - 0.1 * jax.nn.sigmoid(refs_g)
        acc = acc + jnp.dot(y_g.astype(jnp.bfloat16), w2_ref[g],
                            preferred_element_type=jnp.float32)
    o_ref[...] = acc.astype(o_ref.dtype)


def _param_spec(block_shape, index_map):
    """Grid-invariant parameter: single-buffer it (block never changes, so no
    double-buffering needed -> W1/W2 VMEM footprint halves)."""
    try:
        return pl.BlockSpec(block_shape, index_map, pipeline_mode=pl.Buffered(1))
    except TypeError:
        return pl.BlockSpec(block_shape, index_map)


def cronkle_block(x, kparams, *, tile_m=512):
    """x: (B, N, D) float32. kparams: output of prepare_kernel_params."""
    B, N, D = x.shape
    M = B * N
    D5 = NUM_REFS * D
    fused = kparams["fused"]

    # --- VMEM-driven row-tile selection ------------------------------------
    vmem_cap = _vmem_capacity_bytes()
    w_bytes = 2 * NUM_REFS * D * D * 2            # bf16 W1 + W2, single-buffered
    small_bytes = (2 * D + D5 + D) * 4            # gamma/beta/b1/b2, f32
    # Per-row bytes: double-buffered x/out tiles + in-flight f32/bf16 intermediates.
    per_row = (52 if fused else 28) * D
    budget = max(vmem_cap - (8 << 20), 4 << 20)   # headroom for compiler scratch
    tm_cap = (budget - w_bytes - small_bytes) // max(per_row, 1)
    tm_cap = max(8, (int(tm_cap) // 8) * 8)
    # TODO(synk): for D where 20*D^2 bytes of weights alone exceed VMEM, tile
    # the 5D contraction dimension on a second grid axis instead of holding
    # full weights resident.

    tm = min(_round_up(tile_m, 8), tm_cap, _round_up(M, 8))
    # Balance tiles over ragged M so the trailing partial tile isn't tiny.
    tm = min(tm, _round_up(_cdiv(M, _cdiv(M, tm)), 8))
    # Keep >= 2 grid steps when possible so both v7x TensorCores get work.
    if M > 8 and _cdiv(M, tm) < 2:
        tm = _round_up(_cdiv(M, 2), 8)
    grid = (_cdiv(M, tm),)

    x2d = x.reshape(M, D)   # no pad: partial trailing block is clipped by Pallas
    # TODO(synk): for production configs with D < 128 the output last dim is
    # under one lane group (masked vst); re-block the slab as (M/k, k*D)
    # outside the kernel if that configuration matters.

    inv2 = lambda i: (0, 0)
    inv3 = lambda i: (0, 0, 0)

    if fused:
        kernel = cronkle_kernel_fused
        in_specs = [
            pl.BlockSpec((tm, D), lambda i: (i, 0)),            # x tile
            _param_spec((1, D), inv2),                          # ln gamma
            _param_spec((1, D), inv2),                          # ln beta
            _param_spec((D, D5), inv2),                         # W1 (D,5D)
            _param_spec((1, D5), inv2),                         # b1
            _param_spec((D5, D), inv2),                         # W2 (5D,D)
            _param_spec((1, D), inv2),                          # b2 (folded)
        ]
    else:
        kernel = cronkle_kernel_split
        in_specs = [
            pl.BlockSpec((tm, D), lambda i: (i, 0)),            # x tile
            _param_spec((1, D), inv2),                          # ln gamma
            _param_spec((1, D), inv2),                          # ln beta
            _param_spec((NUM_REFS, D, D), inv3),                # W1 groups
            _param_spec((NUM_REFS, 1, D), inv3),                # b1 groups
            _param_spec((NUM_REFS, D, D), inv3),                # W2 groups
            _param_spec((1, D), inv2),                          # b2 (folded)
        ]

    # Advisory cost estimate for the surrounding XLA schedule.
    cost = pl.CostEstimate(
        flops=4 * M * D * D5,                       # two (M,D)x(D,5D)-class matmuls
        transcendentals=M * D5,                     # sigmoid
        bytes_accessed=(2 * M * D * 4               # x in + out
                        + 2 * NUM_REFS * D * D * 2  # W1 + W2 (bf16)
                        + small_bytes),
    )

    need = w_bytes + small_bytes + per_row * tm
    vmem_limit = int(min(vmem_cap, max(need + (8 << 20), 32 << 20)))

    out2d = pl.pallas_call(
        kernel,
        out_shape=jax.ShapeDtypeStruct((M, D), x.dtype),
        grid_spec=pltpu.PrefetchScalarGridSpec(
            num_scalar_prefetch=0,
            grid=grid,
            in_specs=in_specs,
            out_specs=pl.BlockSpec((tm, D), lambda i: (i, 0)),
        ),
        compiler_params=pltpu.CompilerParams(
            dimension_semantics=("parallel",),
            vmem_limit_bytes=vmem_limit),
        cost_estimate=cost,
    )(x2d, kparams["gamma"], kparams["beta"], kparams["w1"], kparams["b1"],
      kparams["w2"], kparams["b2"])

    return out2d.reshape(B, N, D)


def init_params(key, dim):
    """Deterministic synthetic parameters matching the PyTorch shapes (f32)."""
    d5 = NUM_REFS * dim
    k1, k2, k3, k4 = jax.random.split(key, 4)
    # PyTorch nn.Linear stores weight as (out, in); we keep (in, out) so the
    # math is x @ W -- semantics identical.
    bound1 = 1.0 / jnp.sqrt(dim)
    bound2 = 1.0 / jnp.sqrt(d5)
    return {
        "gamma": jnp.ones((1, dim), jnp.float32),     # LayerNorm weight
        "beta": jnp.zeros((1, dim), jnp.float32),     # LayerNorm bias
        "w1": jax.random.uniform(k1, (dim, d5), jnp.float32, -bound1, bound1),
        "b1": jax.random.uniform(k2, (1, d5), jnp.float32, -bound1, bound1),
        "w2": jax.random.uniform(k3, (d5, dim), jnp.float32, -bound2, bound2),
        "b2": jax.random.uniform(k4, (1, dim), jnp.float32, -bound2, bound2),
    }


def prepare_kernel_params(params, *, fuse_groups=None):
    """One-time host-side prep: bf16 weights, refc folded into the combine bias.

    fuse_groups=None -> auto: fuse when D <= 256 (256-wide MXUs on v6e/v7x are
    half idle on per-group (D,D) matmuls; the (TM,5D) intermediate only costs
    real VMEM at large D, where the group-major split is kept instead).
    """
    w1, b1 = params["w1"], params["b1"]          # (D, 5D), (1, 5D)
    w2, b2 = params["w2"], params["b2"]          # (5D, D), (1, D)
    D = w1.shape[0]
    if fuse_groups is None:
        fuse_groups = D <= 256

    # Fold 0.1 * (refc @ W2) into the combine bias (f32).
    refc = jnp.repeat(jnp.array(list(REFS.values()), jnp.float32), D)   # (5D,)
    b2_folded = (b2 + 0.1 * (refc[None, :] @ w2)).astype(jnp.float32)

    if fuse_groups:
        w1_k = w1.astype(jnp.bfloat16)                                   # (D, 5D)
        b1_k = b1.astype(jnp.float32)                                    # (1, 5D)
        w2_k = w2.astype(jnp.bfloat16)                                   # (5D, D)
    else:
        # Group-major layouts: weight[g] is group g's (D, D) block, indexable
        # on the leading axis inside the kernel (no lane slicing).
        w1_k = w1.reshape(D, NUM_REFS, D).transpose(1, 0, 2).astype(jnp.bfloat16)
        b1_k = b1.reshape(NUM_REFS, 1, D).astype(jnp.float32)
        w2_k = w2.reshape(NUM_REFS, D, D).astype(jnp.bfloat16)

    return {
        "fused": bool(fuse_groups),
        "gamma": params["gamma"],
        "beta": params["beta"],
        "w1": w1_k,
        "b1": b1_k,
        "w2": w2_k,
        "b2": b2_folded,
    }


def cronkle_ref(x, params):
    """Pure-JAX f32 reference mirroring the PyTorch forward."""
    B, N, D = x.shape
    mu = jnp.mean(x, axis=-1, keepdims=True)
    var = jnp.mean((x - mu) ** 2, axis=-1, keepdims=True)
    xn = (x - mu) / jnp.sqrt(var + LN_EPS)
    xn = xn * params["gamma"][0] + params["beta"][0]
    refs = xn @ params["w1"] + params["b1"][0]
    refs = refs.reshape(B, N, NUM_REFS, D)
    consts = jnp.array(list(REFS.values()), jnp.float32).reshape(1, 1, NUM_REFS, 1)
    y = refs + 0.1 * (consts - jax.nn.sigmoid(refs))
    out = y.reshape(B, N, NUM_REFS * D) @ params["w2"] + params["b2"][0]
    return out + x


if __name__ == "__main__":
    B, N, D = 2, 8, 32
    key = jax.random.PRNGKey(0)
    kx, kp = jax.random.split(key)
    x = jax.random.normal(kx, (B, N, D), jnp.float32)
    params = init_params(kp, D)
    ref = cronkle_ref(x, params)

    # bf16 matmul operands (f32 accumulation) vs. the f32 reference: loosen
    # the tolerance accordingly (values here are O(1), error is ~1e-2 abs).
    tol = dict(atol=5e-2, rtol=5e-2)

    # Fused-group path (auto-selected for D <= 256).
    out_fused = jax.block_until_ready(
        cronkle_block(x, prepare_kernel_params(params)))
    assert out_fused.shape == (B, N, D)
    assert jnp.allclose(out_fused, ref, **tol), (
        f"fused path mismatch, max abs err = {jnp.max(jnp.abs(out_fused - ref))}")

    # Split-group path (used for large D) -- exercised here for coverage.
    out_split = jax.block_until_ready(
        cronkle_block(x, prepare_kernel_params(params, fuse_groups=False)))
    assert out_split.shape == (B, N, D)
    assert jnp.allclose(out_split, ref, **tol), (
        f"split path mismatch, max abs err = {jnp.max(jnp.abs(out_split - ref))}")

    print("KERNEL_OK")
</pallas_src>

<mosaic_0001>
module attributes {stable_mosaic.version = 11 : i64} {
  func.func @cronkle_kernel_fused(%arg0: i32, %arg1: memref<8x32xf32, #tpu.memory_space<vmem>>, %arg2: memref<1x32xf32, #tpu.memory_space<vmem>>, %arg3: memref<1x32xf32, #tpu.memory_space<vmem>>, %arg4: memref<32x160xbf16, #tpu.memory_space<vmem>>, %arg5: memref<1x160xf32, #tpu.memory_space<vmem>>, %arg6: memref<160x32xbf16, #tpu.memory_space<vmem>>, %arg7: memref<1x32xf32, #tpu.memory_space<vmem>>, %arg8: memref<8x32xf32, #tpu.memory_space<vmem>>) attributes {dimension_semantics = [#tpu.dimension_semantics<parallel>], iteration_bounds = array<i64: 2>, scalar_prefetch = 0 : i64, scratch_operands = 0 : i64, tpu.core_type = #tpu.core_type<tc>, window_params = [{transform_indices = @transform_0, window_bounds = array<i64: 8, 32>}, {pipeline_mode = #tpu.pipeline_mode<synchronous>, transform_indices = @transform_1, window_bounds = array<i64: 1, 32>}, {pipeline_mode = #tpu.pipeline_mode<synchronous>, transform_indices = @transform_2, window_bounds = array<i64: 1, 32>}, {pipeline_mode = #tpu.pipeline_mode<synchronous>, transform_indices = @transform_3, window_bounds = array<i64: 32, 160>}, {pipeline_mode = #tpu.pipeline_mode<synchronous>, transform_indices = @transform_4, window_bounds = array<i64: 1, 160>}, {pipeline_mode = #tpu.pipeline_mode<synchronous>, transform_indices = @transform_5, window_bounds = array<i64: 160, 32>}, {pipeline_mode = #tpu.pipeline_mode<synchronous>, transform_indices = @transform_6, window_bounds = array<i64: 1, 32>}, {transform_indices = @transform_7, window_bounds = array<i64: 8, 32>}]} {
    %c0 = arith.constant 0 : index
    %c0_0 = arith.constant 0 : index
    %0 = vector.load %arg1[%c0, %c0_0] : memref<8x32xf32, #tpu.memory_space<vmem>>, vector<8x32xf32>
    %c0_1 = arith.constant 0 : index
    %c0_2 = arith.constant 0 : index
    %1 = vector.load %arg2[%c0_1, %c0_2] : memref<1x32xf32, #tpu.memory_space<vmem>>, vector<1x32xf32>
    %c0_3 = arith.constant 0 : index
    %c0_4 = arith.constant 0 : index
    %2 = vector.load %arg3[%c0_3, %c0_4] : memref<1x32xf32, #tpu.memory_space<vmem>>, vector<1x32xf32>
    %cst = arith.constant dense<0.000000e+00> : vector<8xf32>
    %3 = vector.multi_reduction <add>, %0, %cst [1] : vector<8x32xf32> to vector<8xf32>
    %4 = vector.shape_cast %3 : vector<8xf32> to vector<8x1xf32>
    %cst_5 = arith.constant 3.200000e+01 : f32
    %5 = vector.broadcast %cst_5 : f32 to vector<8x1xf32>
    %6 = arith.divf %4, %5 : vector<8x1xf32>
    %7 = arith.mulf %0, %0 : vector<8x32xf32>
    %cst_6 = arith.constant dense<0.000000e+00> : vector<8xf32>
    %8 = vector.multi_reduction <add>, %7, %cst_6 [1] : vector<8x32xf32> to vector<8xf32>
    %9 = vector.shape_cast %8 : vector<8xf32> to vector<8x1xf32>
    %cst_7 = arith.constant 3.200000e+01 : f32
    %10 = vector.broadcast %cst_7 : f32 to vector<8x1xf32>
    %11 = arith.divf %9, %10 : vector<8x1xf32>
    %12 = arith.mulf %6, %6 : vector<8x1xf32>
    %13 = arith.subf %11, %12 : vector<8x1xf32>
    %cst_8 = arith.constant 0.000000e+00 : f32
    %14 = vector.broadcast %cst_8 : f32 to vector<8x1xf32>
    %15 = arith.maximumf %13, %14 : vector<8x1xf32>
    %16 = vector.broadcast %6 : vector<8x1xf32> to vector<8x32xf32>
    %17 = arith.subf %0, %16 : vector<8x32xf32>
    %cst_9 = arith.constant 9.99999974E-6 : f32
    %18 = vector.broadcast %cst_9 : f32 to vector<8x1xf32>
    %19 = arith.addf %15, %18 : vector<8x1xf32>
    %20 = math.rsqrt %19 : vector<8x1xf32>
    %21 = vector.broadcast %20 : vector<8x1xf32> to vector<8x32xf32>
    %22 = arith.mulf %17, %21 : vector<8x32xf32>
    %23 = vector.broadcast %1 : vector<1x32xf32> to vector<8x32xf32>
    %24 = arith.mulf %22, %23 : vector<8x32xf32>
    %25 = vector.broadcast %2 : vector<1x32xf32> to vector<8x32xf32>
    %26 = arith.addf %24, %25 : vector<8x32xf32>
    %27 = arith.truncf %26 : vector<8x32xf32> to vector<8x32xbf16>
    %c0_10 = arith.constant 0 : index
    %c0_11 = arith.constant 0 : index
    %28 = vector.load %arg4[%c0_10, %c0_11] : memref<32x160xbf16, #tpu.memory_space<vmem>>, vector<32x160xbf16>
    %cst_12 = arith.constant dense<0.000000e+00> : vector<8x160xf32>
    %29 = tpu.matmul %27, %28, %cst_12 {dimension_numbers = #tpu.dot_dimension_numbers<[1], [0], [0], [1], [0, 0, 1, 1], [], []>} : vector<8x32xbf16>, vector<32x160xbf16>, vector<8x160xf32> -> vector<8x160xf32>
    %c0_13 = arith.constant 0 : index
    %c0_14 = arith.constant 0 : index
    %30 = vector.load %arg5[%c0_13, %c0_14] : memref<1x160xf32, #tpu.memory_space<vmem>>, vector<1x160xf32>
    %31 = vector.broadcast %30 : vector<1x160xf32> to vector<8x160xf32>
    %32 = arith.addf %29, %31 : vector<8x160xf32>
    %33 = arith.negf %32 : vector<8x160xf32>
    %34 = math.exp %33 : vector<8x160xf32>
    %cst_15 = arith.constant 1.000000e+00 : f32
    %35 = vector.broadcast %cst_15 : f32 to vector<8x160xf32>
    %36 = arith.addf %35, %34 : vector<8x160xf32>
    %37 = arith.divf %35, %36 : vector<8x160xf32>
    %cst_16 = arith.constant 1.000000e-01 : f32
    %38 = vector.broadcast %cst_16 : f32 to vector<8x160xf32>
    %39 = arith.mulf %38, %37 : vector<8x160xf32>
    %40 = arith.subf %32, %39 : vector<8x160xf32>
    %c0_17 = arith.constant 0 : index
    %c0_18 = arith.constant 0 : index
    %41 = vector.load %arg7[%c0_17, %c0_18] : memref<1x32xf32, #tpu.memory_space<vmem>>, vector<1x32xf32>
    %42 = vector.broadcast %41 : vector<1x32xf32> to vector<8x32xf32>
    %43 = arith.addf %0, %42 : vector<8x32xf32>
    %44 = arith.truncf %40 : vector<8x160xf32> to vector<8x160xbf16>
    %c0_19 = arith.constant 0 : index
    %c0_20 = arith.constant 0 : index
    %45 = vector.load %arg6[%c0_19, %c0_20] : memref<160x32xbf16, #tpu.memory_space<vmem>>, vector<160x32xbf16>
    %cst_21 = arith.constant dense<0.000000e+00> : vector<8x32xf32>
    %46 = tpu.matmul %44, %45, %cst_21 {dimension_numbers = #tpu.dot_dimension_numbers<[1], [0], [0], [1], [0, 0, 1, 1], [], []>} : vector<8x160xbf16>, vector<160x32xbf16>, vector<8x32xf32> -> vector<8x32xf32>
    %47 = arith.addf %43, %46 : vector<8x32xf32>
    %c0_22 = arith.constant 0 : index
    %c0_23 = arith.constant 0 : index
    %48 = vector.load %arg8[%c0_22, %c0_23] : memref<8x32xf32, #tpu.memory_space<vmem>>, vector<8x32xf32>
    tpu.vector_store %arg8[%c0_22, %c0_23], %47 {strides = array<i32>} : memref<8x32xf32, #tpu.memory_space<vmem>>, vector<8x32xf32>,
    return
  }
  func.func @transform_0(%arg0: i32) -> (i32, i32) {
    %c0_i32 = arith.constant 0 : i32
    %c0_i32_0 = arith.constant 0 : i32
    return %arg0, %c0_i32 : i32, i32
  }
  func.func @transform_1(%arg0: i32) -> (i32, i32) {
    %c0_i32 = arith.constant 0 : i32
    %c0_i32_0 = arith.constant 0 : i32
    %c0_i32_1 = arith.constant 0 : i32
    return %c0_i32, %c0_i32_0 : i32, i32
  }
  func.func @transform_2(%arg0: i32) -> (i32, i32) {
    %c0_i32 = arith.constant 0 : i32
    %c0_i32_0 = arith.constant 0 : i32
    %c0_i32_1 = arith.constant 0 : i32
    return %c0_i32, %c0_i32_0 : i32, i32
  }
  func.func @transform_3(%arg0: i32) -> (i32, i32) {
    %c0_i32 = arith.constant 0 : i32
    %c0_i32_0 = arith.constant 0 : i32
    %c0_i32_1 = arith.constant 0 : i32
    return %c0_i32, %c0_i32_0 : i32, i32
  }
  func.func @transform_4(%arg0: i32) -> (i32, i32) {
    %c0_i32 = arith.constant 0 : i32
    %c0_i32_0 = arith.constant 0 : i32
    %c0_i32_1 = arith.constant 0 : i32
    return %c0_i32, %c0_i32_0 : i32, i32
  }
  func.func @transform_5(%arg0: i32) -> (i32, i32) {
    %c0_i32 = arith.constant 0 : i32
    %c0_i32_0 = arith.constant 0 : i32
    %c0_i32_1 = arith.constant 0 : i32
    return %c0_i32, %c0_i32_0 : i32, i32
  }
  func.func @transform_6(%arg0: i32) -> (i32, i32) {
    %c0_i32 = arith.constant 0 : i32
    %c0_i32_0 = arith.constant 0 : i32
    %c0_i32_1 = arith.constant 0 : i32
    return %c0_i32, %c0_i32_0 : i32, i32
  }
  func.func @transform_7(%arg0: i32) -> (i32, i32) {
    %c0_i32 = arith.constant 0 : i32
    %c0_i32_0 = arith.constant 0 : i32
    return %arg0, %c0_i32 : i32, i32
  }
}

</mosaic_0001>

<bundles_post_ra>
// kernel: tpu_custom_call.1
= control target key start
LH: loop header
LB: loop body
LE: loop exit
PB: predicated region body
PF: predicated region fallthrough
CT: control target
= control target key end

     0   :  { %12 = vsyncpa [#allocation3], 0  ;;  %s1023_s0 = inlined_call_operand.vmem [shape: f32[16,32], index: 0, kind: input, shape index: {}]   ;;  %s1024_s1 = inlined_call_operand.vmem [shape: f32[1,32], index: 1, kind: input, shape index: {}]   ;;  %s1025_s2 = inlined_call_operand.vmem [shape: f32[1,32], index: 2, kind: input, shape index: {}]   ;;  %s1026_s3 = inlined_call_operand.vmem [shape: bf16[32,160], index: 3, kind: input, shape index: {}]   ;;  %s1027_s4 = inlined_call_operand.vmem [shape: f32[1,160], index: 4, kind: input, shape index: {}]   ;;  %s1028_s5 = inlined_call_operand.vmem [shape: bf16[160,32], index: 5, kind: input, shape index: {}]   ;;  %s1029_s6 = inlined_call_operand.vmem [shape: f32[1,32], index: 6, kind: input, shape index: {}]   ;;  %s1030_s7 = inlined_call_operand.hbm [shape: f32[16,32], index: 7, kind: output, shape index: {}]  }
   0x1   :  { %14 = vsyncpa [#allocation3 + $0x1], 0  ;;  %s859_s24 = smov 0   ;;  %s861_s25 = smov 0  }
   0x2   :  { %s863_s26 = smov 0   ;;  %s865_s27 = smov 0  }
   0x3 LB: > { %s880_s28 = sadd.s32 4294967295, %s816_s27   ;;  %s614_s29 = sadd.s32 4294967294, %s816_s27   ;;  %s816_s27 = sphi %s865_s27, %s1036_s27   ;;  %s812_s26 = sphi %s863_s26, %s1035_s26   ;;  %s808_s25 = sphi %s861_s25, %s1034_s25   ;;  %s804_s24 = sphi %s859_s24, %s1033_s24  }
   0x4   : > { %s884_s30 = sadd.s32 1, %s816_s27   ;;  %s179_s8 = sadd.s32 1, %s812_s26 }
   0x5   : > { %s176_s9 = ssub.s32 %s816_s27, %s884_s30  ;;  %p189_p0 = scmp.ne.s32.totalorder %s812_s26, %s808_s25 }
   0x6   : > { %p177_p1 = scmp.eq.s32.totalorder %s176_s9, 0  ;;  %p190_p2 = scmp.eq.s32.totalorder %s880_s28, 1 }
   0x7   : > { %p195_p3 = scmp.ne.s32.totalorder %s808_s25, %s804_s24  ;;  %p196_p4 = scmp.eq.s32.totalorder %s614_s29, 1 }
   0x8   : > { %s895_s10 = scalar_select %p177_p1, %s812_s26, %s179_s8  }
   0x9   : > { %p897_p5 = por %p190_p2, %p189_p0  ;;  %p901_p6 = por %p196_p4, %p195_p3 }
   0xa   : > { %p617_p7 = scmp.ge.s32.totalorder %s816_s27, 1  ;;  %p239_p8 = scmp.lt.s32.totalorder %s816_s27, 3 }
   0xc   : > { %p240_p9 = pnand %p617_p7, %p239_p8 }
   0xd   : > { %p270_p10 = scmp.lt.s32.totalorder (!%p240_p9), %s880_s28, 1  ;;  %s267_s18 = sand.u32 (!%p240_p9), 1, %s808_s25  }
   0xe   : > { %243 = sbr.rel (%p240_p9) target bundleno = 486 (0x1e6), region = 48  ;;  %s618_s19 = sshll.u32 (!%p240_p9), %s267_s18, 3 }
   0xf   : > { %s682_s20 = sshll.u32 (!%p240_p9), %s880_s28, 3  ;;  %s269_s9 = scalar_lea.vmem (!%p240_p9), [#allocation2], %s618_s19 }
  0x10   : > { %s550_s8 = scalar_lea.hbm (!%p240_p9), %s1030_s7, %s682_s20  ;;  %s774_s19 = scalar_lea.hbm (!%p240_p9), %s1030_s7, 16 }
  0x13   : > { %s271_s13 = scalar_select %p270_p10, %s880_s28, 1  ;;  %vm278_vm0 = vcmask 261120   ;;  %v818_v4 = vmov 32.0   ;;  %v630_v11 = vld [vmem:[%s1026_s3 + $0x10] sm:$0xf]  ;;  %v696_v45 = vld [vmem:[%s1028_s5 + $0x38] sm:$0xff] }
  0x14   : > { %742 = vrcp.f32 %v818_v4  ;;  %v688_v12 = vld [vmem:[%s1026_s3 + $0x14] sm:$0xf0]  ;;  %v687_v13 = vld [vmem:[%s1026_s3 + $0x14] sm:$0xf]  ;;  %v632_v15 = vld [vmem:[%s1026_s3 + $0x18] sm:$0xf0]  ;;  %511 = vmatpush.bf16.msra.mxu2 %v696_v45 }
  0x15   : > { %s619_s14 = sshll.u32 %s271_s13, 3  ;;  %v631_v14 = vor.u32 %v688_v12, %v630_v11  ;;  %v622_v16 = vld [vmem:[%s1026_s3] sm:$0xf]  ;;  %v686_v17 = vld [vmem:[%s1026_s3 + $0x4] sm:$0xf0]  ;;  %v635_v19 = vor.u32 %v687_v13, %v632_v15  ;;  %v695_v46 = vld [vmem:[%s1028_s5 + $0x30] sm:$0xff] }
  0x16   : > { %s273_s17 = scalar_lea.vmem %s1023_s0, %s619_s14  ;;  %v685_v20 = vld [vmem:[%s1026_s3 + $0x4] sm:$0xf]  ;;  %v624_v21 = vld [vmem:[%s1026_s3 + $0x8] sm:$0xf0]  ;;  %v623_v22 = vor.u32 %v686_v17, %v622_v16  ;;  %v739_v38 = vld [vmem:[%s1024_s1] ss:$0 sm:$0xff] }
  0x17   : > { %v912_v0 = vld [vmem:[%s273_s17] sm:$0xff]  ;;  %359 = vmatpush.bf16.msra.mxu0 %v631_v14  ;;  %372 = vmatpush.bf16.msra.mxu1 %v635_v19  ;;  %v627_v23 = vor.u32 %v685_v20, %v624_v21  ;;  %v694_v47 = vld [vmem:[%s1028_s5 + $0x28] sm:$0xff]  ;;  %v692_v49 = vld [vmem:[%s1028_s5 + $0x18] sm:$0xff]  ;;  %s552_s13 = sshll.u32 %s269_s9, 4  ;;  %s554_s14 = sshll.u32 %s550_s8, 4  ;;  %s553_s13 = int_to_ptr.vmem [resolvable:$true] %s552_s13  ;;  %s555_s14 = int_to_ptr.hbm [resolvable:$true] %s554_s14 }
  0x18   : > { %v279_v1 = vsel %vm278_vm0, %v912_v0, 0.0  ;;  %v290_v2 = vmul.f32 %v912_v0, %v912_v0  ;;  %v740_v41 = vld [vmem:[%s1025_s2] ss:$0 sm:$0xff]  ;;  %512 = vmatpush.bf16.msra.mxu2 %v695_v46  ;;  %v691_v50 = vld [vmem:[%s1028_s5 + $0x10] sm:$0xff]  ;;  %v690_v54 = vld [vmem:[%s1028_s5 + $0x8] sm:$0xff]  ;;  %s540_s28 = scalar_lea.sflag [#allocation3], %s267_s18 }
  0x19   : > { %280 = vadd.xlane.f32.xlu0 %v279_v1  ;;  %v693_v48 = vld [vmem:[%s1028_s5 + $0x20] sm:$0xff]  ;;  %v698_v55 = vld [vmem:[%s1028_s5 + $0x48] sm:$0xff]  ;;  %s768_s15 = sshra.s32 %s555_s14, 4  ;;  %s769_s15 = int_to_ptr.hbm [resolvable:$true] %s768_s15 }
  0x1a   : > { %v291_v3 = vsel %vm278_vm0, %v290_v2, 0.0  ;;  %v743_v5 = vpop.eup %742  ;;  %v324_v51 = vld [vmem:[%s1027_s4] sm:$0x3]  ;;  %530 = vmatpush.bf16.msra.mxu3 %v698_v55  ;;  %s770_s16 = scalar_lea.hbm %s769_s15, 8  ;;  %p775_p0 = scmp.lt.s32.totalorder %s769_s15, %s1030_s7 }
  0x1b   : > { %v283_v6 = vmul.f32 32.0, %v743_v5  ;;  %vm287_vm1 = vweird.f32 %v743_v5  ;;  %360 = vmatpush.bf16.msra.mxu0 %v623_v22  ;;  %373 = vmatpush.bf16.msra.mxu1 %v627_v23  ;;  %v326_v52 = vperm.slane %v324_v51, 0  ;;  %v327_v53 = vperm.slane %v324_v51, 1  ;;  %v689_v60 = vld [vmem:[%s1028_s5] sm:$0xff]  ;;  %p771_p11 = scmp.ne.s32.totalorder %s769_s15, %s770_s16  ;;  %p776_p1 = scmp.lt.s32.totalorder %s774_s19, %s770_s16 }
  0x1c   : > { %513 = vmatpush.bf16.msra.mxu2 %v694_v47  ;;  %v697_v61 = vld [vmem:[%s1028_s5 + $0x40] sm:$0xff] }
  0x1d   : > { %v284_v7 = vsub.f32 1.0, %v283_v6  ;;  %p772_p12 = pnand %p771_p11, %p897_p5  ;;  %p777_p2 = por %p776_p1, %p775_p0 }
  0x1e   : > { %531 = vmatpush.bf16.msra.mxu3 %v697_v61 }
  0x1f   : > { %v285_v8 = vmul.f32 %v743_v5, %v284_v7  ;;  %p773_p13 = pneg %p772_p12 }
  0x20   : > { %514 = vmatpush.bf16.msra.mxu2 %v693_v48 }
  0x21   : > { %292 = vadd.xlane.f32.xlu0 %v291_v3  ;;  %v286_v9 = vadd.f32 %v743_v5, %v285_v8  ;;  %p778_p3 = pnand %p777_p2, %p773_p13 }
  0x23   : > { %v288_v18 = vsel %vm287_vm1, %v743_v5, %v286_v9 }
  0x24   : > { %515 = vmatpush.bf16.msra.mxu2 %v692_v49 }
  0x28   : > { %516 = vmatpush.bf16.msra.mxu2 %v691_v50 }
  0x2c   : > { %517 = vmatpush.bf16.msra.mxu2 %v690_v54 }
  0x30   : > { %518 = vmatpush.bf16.msra.mxu2 %v689_v60 }
  0x8c   : > { %v281_v10 = vpop.xlane.xlu0 %280 }
  0x8d   : > { %v289_v24 = vmul.f32 %v288_v18, %v281_v10 }
  0x8f   : > { %v295_v26 = vmul.f32 %v289_v24, %v289_v24  ;;  %v298_v37 = vsub.f32 %v912_v0, %v289_v24 }
  0x94   : > { %v293_v25 = vpop.xlane.xlu0 %292 }
  0x95   : > { %v294_v27 = vmul.f32 %v293_v25, %v288_v18 }
  0x97   : > { %v296_v28 = vsub.f32 %v294_v27, %v295_v26 }
  0x99   : > { %v297_v29 = vmax.f32 %v296_v28, 0.0 }
  0x9b   : > { %v299_v30 = vadd.f32 1e-05, %v297_v29 }
  0x9d   : > { %744 = vrsqrt.f32 %v299_v30  ;;  %vm306_vm3 = vweird.f32 %v299_v30 }
  0xa3   : > { %v745_v31 = vpop.eup %744 }
  0xa4   : > { %v301_v32 = vmul.f32 %v745_v31, %v299_v30  ;;  %vm307_vm2 = vweird.f32 %v745_v31 }
  0xa5   : > { %vm308_vm4 = vmor %vm306_vm3, %vm307_vm2 }
  0xa6   : > { %v302_v33 = vmul.f32 %v745_v31, %v301_v32 }
  0xa8   : > { %v303_v34 = vmul.f32 0.5, %v302_v33  ;;  %v741_v33 = vld [vmem:[%s1029_s6] ss:$0 sm:$0xff] }
  0xaa   : > { %v304_v35 = vsub.f32 1.5, %v303_v34 }
  0xac   : > { %v305_v36 = vmul.f32 %v745_v31, %v304_v35  ;;  %v425_v35 = vadd.f32 %v741_v33, %v912_v0 }
  0xae   : > { %v309_v39 = vsel %vm308_vm4, %v745_v31, %v305_v36 }
  0xaf   : > { %v310_v40 = vmul.f32 %v309_v39, %v298_v37 }
  0xb1   : > { %v314_v42 = vmul.f32 %v739_v38, %v310_v40 }
  0xb3   : > { %v318_v43 = vadd.f32 %v740_v41, %v314_v42 }
  0xb5   : > { %v319_v44 = vpack.c.bf16 %v318_v43, %v318_v43 }
  0xb7   : > { %636 = vmatmul.msk.bf16.vlgmr.msra.gmra.mxu0 %vm278_vm0, %v319_v44  ;;  %637 = vmatmul.msk.bf16.vlgmr.msra.gmra.mxu1 %vm278_vm0, %v319_v44 }
 0x134   : > { %v362_v56 = vpop.f32.mrf.mxu0  ;;  %v375_v57 = vpop.f32.mrf.mxu1 }
 0x135   : > { %v363_v58 = vadd.f32 %v362_v56, %v326_v52  ;;  %v376_v59 = vadd.f32 %v375_v57, %v327_v53 }
 0x137   : > { %v638_v62 = vmul.f32 -1.442695, %v363_v58  ;;  %v639_v63 = vmul.f32 -1.442695, %v376_v59 }
 0x139   : > { %746 = vpow2.f32 %v638_v62 }
 0x13a   : > { %748 = vpow2.f32 %v639_v63 }
 0x13c   : > { %v364_v1 = vpop.f32.mrf.mxu0  ;;  %v377_v2 = vpop.f32.mrf.mxu1 }
 0x13f   : > { %v747_v3 = vpop.eup %746 }
 0x140   : > { %v749_v4 = vpop.eup %748  ;;  %v385_v5 = vadd.f32 1.0, %v747_v3 }
 0x141   : > { %v386_v6 = vadd.f32 1.0, %v749_v4 }
 0x142   : > { %750 = vrcp.f32 %v385_v5  ;;  %v398_v13 = vand.u32 2147483648, %v385_v5  ;;  %v396_v16 = vand.u32 2147483647, %v385_v5  ;;  %vm392_vm7 = vweird.f32 %v385_v5 }
 0x143   : > { %752 = vrcp.f32 %v386_v6  ;;  %v413_v14 = vand.u32 2147483648, %v386_v6  ;;  %v411_v18 = vand.u32 2147483647, %v386_v6  ;;  %vm407_vm8 = vweird.f32 %v386_v6 }
 0x144   : > { %v399_v21 = vor.u32 1.1754944e-38, %v398_v13  ;;  %vm397_vm11 = vcmp.eq.f32.partialorder %v396_v16, 8.507059e+37 }
 0x145   : > { %v414_v22 = vor.u32 1.1754944e-38, %v413_v14  ;;  %vm412_vm12 = vcmp.eq.f32.partialorder %v411_v18, 8.507059e+37 }
 0x148   : > { %v751_v7 = vpop.eup %750 }
 0x149   : > { %v753_v8 = vpop.eup %752  ;;  %v388_v9 = vmul.f32 %v751_v7, %v385_v5  ;;  %vm393_vm5 = vweird.f32 %v751_v7 }
 0x14a   : > { %v403_v10 = vmul.f32 %v753_v8, %v386_v6  ;;  %vm408_vm6 = vweird.f32 %v753_v8  ;;  %vm394_vm9 = vmor %vm392_vm7, %vm393_vm5 }
 0x14b   : > { %v389_v11 = vsub.f32 1.0, %v388_v9  ;;  %vm409_vm10 = vmor %vm407_vm8, %vm408_vm6 }
 0x14c   : > { %v404_v12 = vsub.f32 1.0, %v403_v10 }
 0x14d   : > { %v390_v15 = vmul.f32 %v751_v7, %v389_v11 }
 0x14e   : > { %v405_v17 = vmul.f32 %v753_v8, %v404_v12 }
 0x14f   : > { %v391_v19 = vadd.f32 %v751_v7, %v390_v15 }
 0x150   : > { %v406_v20 = vadd.f32 %v753_v8, %v405_v17 }
 0x151   : > { %v395_v23 = vsel %vm394_vm9, %v751_v7, %v391_v19 }
 0x152   : > { %v410_v24 = vsel %vm409_vm10, %v753_v8, %v406_v20  ;;  %v400_v25 = vsel %vm397_vm11, %v399_v21, %v395_v23 }
 0x153   : > { %v415_v26 = vsel %vm412_vm12, %v414_v22, %v410_v24  ;;  %v417_v27 = vmul.f32 0.1, %v400_v25 }
 0x154   : > { %v418_v28 = vmul.f32 0.1, %v415_v26 }
 0x155   : > { %v419_v29 = vsub.f32 %v363_v58, %v417_v27 }
 0x156   : > { %v420_v30 = vsub.f32 %v376_v59, %v418_v28 }
 0x157   : > { %v426_v31 = vpack.c.bf16 %v419_v29, %v419_v29 }
 0x158   : > { %v427_v32 = vpack.c.bf16 %v420_v30, %v420_v30 }
 0x159   : > { %519 = vmatmul.bf16.vlgmr.msra.gmra.mxu2 %v426_v31 }
 0x15a   : > { %680 = vmatmul.msk.bf16.vlgmr.msra.gmra.mxu3 %vm278_vm0, %v427_v32 }
 0x1dc   : > { %v520_v34 = vpop.f32.mrf.mxu2 }
 0x1dd   : > { %v533_v36 = vpop.f32.mrf.mxu3 }
 0x1de   : > { %v534_v37 = vadd.f32 %v533_v36, %v520_v34 }
 0x1e0   : > { %v537_v38 = vadd.f32 %v534_v37, %v425_v35 }
 0x1e2   : > { %538 = vst.msk [vmem:[%s269_s9] sm:$0xff] %vm278_vm0, %v537_v38 }
 0x1e3   : > { %781 = shalt.err (!%p778_p3)
}
 0x1e4   : > { %699 = dma.vmem_to_hbm [thread:$0]  (%p897_p5), %s553_s13, 128, %s555_s14, %s540_s28   ;;  %v522_v0 = vpop.f32.mrf.mxu2 }
 0x1e5   : > { %v535_v39 = vpop.f32.mrf.mxu3 }
 0x1e6 PF: > { %p705_p4 = scmp.ge.s32.totalorder %s816_s27, 2  ;;  %s566_s18 = sand.u32 1, %s804_s24  }
 0x1e7   : > { %s567_s23 = scalar_lea.sflag [#allocation3], %s566_s18 }
 0x1e8   : > { %p702_p7 = pnand %p705_p4, %p901_p6 }
 0x1ea   : > { %p703_p8 = pneg %p702_p7 }
 0x1ec   : > { %799 = dma.done.wait (%p703_p8), %s567_s23, 128  }
 0x1ed   : > { %801 = vsyncadd (%p703_p8), %s567_s23, 4294967168  ;;  %p17_p5 = scmp.ge.s32.totalorder %s884_s30, 4   ;;  %s1033_s24 = smov %s808_s25 }
 0x1ee   : > { %s1034_s25 = smov %s812_s26  ;;  %s1035_s26 = smov %s895_s10 }
 0x1ef   : > { %s1036_s27 = smov %s884_s30  ;;  %19 = sbr.rel (!%p17_p5) target bundleno = 3 (0x3), region = 83 }
 0x1f4   :  { %573 = vsyncpa [#allocation3], 1 }
 0x1f5   :  { %575 = vsyncpa [#allocation3 + $0x1], 1 }

</bundles_post_ra>
